<compile_context>
chip_gen: v5e
topology: v5e:2x2
jax: 0.10.0
libtpu: 0.0.40
codegen_flags: <defaults>
</compile_context>

<pallas_src>
import functools

import jax
import jax.numpy as jnp
from jax.experimental import pallas as pl
from jax.experimental.pallas import tpu as pltpu


def self_attention_kernel(x_ref, wqkv_ref, bqkv_ref, w1_ref, b1_ref,
                          w2_ref, b2_ref, gamma_ref, beta_ref, o_ref,
                          *, eps, c8p, kv_block):
    x = x_ref[...]                                        # (HW, C) f32
    hw = x.shape[0]

    # Fused 1x1-conv projections: one MXU pass, bf16 operands, f32 accumulate.
    # Weight layout is [q | k | v] with q/k zero-padded to c8p lanes, so every
    # slice below starts on a 128-lane boundary and the QK contraction fills
    # the MXU depth.  The softmax scale is already folded into wq / bq.
    qkv = jnp.dot(x.astype(jnp.bfloat16), wqkv_ref[...],
                  preferred_element_type=jnp.float32) + bqkv_ref[...]
    q_bf = qkv[:, :c8p].astype(jnp.bfloat16)              # (HW, c8p)
    k_bf = qkv[:, c8p:2 * c8p].astype(jnp.bfloat16)       # (HW, c8p)
    v_bf = qkv[:, 2 * c8p:].astype(jnp.bfloat16)          # (HW, C)

    # Attention, tiled over the key-pixel axis j.  softmax(dim=-2) normalizes
    # over the query index i, so each key block is an independent softmax and
    # the output is a plain accumulation over key blocks (first block peeled,
    # so no zeros slab / extra add).
    out = None
    for jb in range(hw // kv_block):
        ks = jb * kv_block
        k_blk = k_bf[ks:ks + kv_block, :]                 # (TJ, c8p)
        v_blk = v_bf[ks:ks + kv_block, :]                 # (TJ, C)
        # logits[i, j] = q_i . k_j   (contract last dims; padded lanes are 0)
        logits = jax.lax.dot_general(
            q_bf, k_blk, (((1,), (1,)), ((), ())),
            preferred_element_type=jnp.float32)           # (HW, TJ) f32
        m = jnp.max(logits, axis=0, keepdims=True)        # per-column (query) max
        e = jnp.exp((logits - m).astype(jnp.bfloat16))    # bf16 EUP exp
        denom = jnp.sum(e.astype(jnp.float32), axis=0, keepdims=True)
        inv = pl.reciprocal(denom, approx=True).astype(jnp.bfloat16)
        p = e * inv                                       # normalized probs, bf16
        # out[i, :] += sum_j p[i, j] * v[j, :]  == bmm(v, attn.permute(0,2,1))
        pv = jnp.dot(p, v_blk, preferred_element_type=jnp.float32)
        out = pv if out is None else out + pv

    # MLP over channels: Linear -> ReLU -> Linear (bf16 MXU, f32 accumulate).
    h = jnp.maximum(
        jnp.dot(out.astype(jnp.bfloat16), w1_ref[...],
                preferred_element_type=jnp.float32) + b1_ref[...], 0.0)
    mlp_out = jnp.dot(h.astype(jnp.bfloat16), w2_ref[...],
                      preferred_element_type=jnp.float32) + b2_ref[...]

    # Residual + LayerNorm over all (C, H, W) elements of this batch element.
    # One statistics pass over `res` (var = E[x^2] - mu^2, f32 accumulation),
    # normalize * gamma + beta fused directly into the output write.
    res = mlp_out + x
    inv_n = 1.0 / (res.shape[0] * res.shape[1])
    mu = jnp.sum(res) * inv_n
    var = jnp.sum(res * res) * inv_n - mu * mu
    inv_std = jax.lax.rsqrt(var + eps)
    o_ref[...] = (res - mu) * inv_std * gamma_ref[...] + beta_ref[...]


def self_attention_pallas(x_nchw, params, eps=1e-5):
    B, C, H, W = x_nchw.shape
    HW = H * W
    C8 = C // 8
    scale = float(C8) ** -0.5
    c8p = ((C8 + 127) // 128) * 128        # lane-aligned padded q/k width

    # Best-effort chip query: VMEM capacity drives the key-block cap and the
    # scoped-VMEM request.
    try:
        vmem_cap = int(pltpu.get_tpu_info().vmem_capacity_bytes)
    except Exception:
        vmem_cap = None

    # Largest divisor of HW not exceeding the cap (256 on <=64 MiB-VMEM chips,
    # i.e. v7x; 512 otherwise).  Removes the old divisibility restriction.
    kv_cap = 256 if (vmem_cap is not None and vmem_cap <= 96 * 1024 * 1024) else 512
    kv_block = min(HW, kv_cap)
    while HW % kv_block:
        kv_block -= 1

    # NCHW -> (B, HW, C)
    x_flat = jnp.transpose(x_nchw, (0, 2, 3, 1)).reshape(B, HW, C).astype(jnp.float32)
    # LayerNorm affine params (C, H, W) -> (HW, C) to match kernel layout.
    gamma_flat = jnp.transpose(params["ln_gamma"], (1, 2, 0)).reshape(HW, C)
    beta_flat = jnp.transpose(params["ln_beta"], (1, 2, 0)).reshape(HW, C)

    # Fused QKV projection weights, ordered [q | k | v]; q and k are zero-
    # padded to c8p columns so every slice of the projection output is lane
    # aligned and the QK contraction is 128 deep.  The softmax scale is folded
    # into wq / bq here (one-time weight transform, not a per-call op).
    def pad_cols(w, width):
        return jnp.pad(w, ((0, 0), (0, width - w.shape[1])))

    wqkv = jnp.concatenate(
        [pad_cols(params["wq"] * scale, c8p),
         pad_cols(params["wk"], c8p),
         params["wv"]], axis=1).astype(jnp.bfloat16)       # (C, 2*c8p + C)
    bqkv = jnp.concatenate(
        [pad_cols(params["bq"] * scale, c8p),
         pad_cols(params["bk"], c8p),
         params["bv"]], axis=1).astype(jnp.float32)        # (1, 2*c8p + C)
    w1 = params["w1"].astype(jnp.bfloat16)
    w2 = params["w2"].astype(jnp.bfloat16)

    # Right-sized scoped-VMEM request: block footprint (double-buffered) plus
    # a liberal estimate of the in-kernel intermediates, with margin.
    qkv_w = C + 2 * c8p
    f32b, bf16b = 4, 2
    block_bytes = (
        2 * (HW * C * f32b) * 2                            # x + out blocks
        + 2 * (HW * C * f32b) * 2                          # gamma + beta
        + (C * qkv_w * bf16b + qkv_w * f32b) * 2           # wqkv + bqkv
        + 2 * (C * C * bf16b + C * f32b) * 2               # w1/b1, w2/b2
    )
    inter_bytes = HW * (
        C * f32b                                           # x (f32)
        + qkv_w * (f32b + bf16b)                           # qkv f32 + q/k/v bf16
        + kv_block * (f32b + 2 * bf16b)                    # logits f32 + e, p bf16
        + 4 * C * f32b                                     # out, h, mlp_out, res
    )
    est = block_bytes + inter_bytes
    hi = (100 * 1024 * 1024 if vmem_cap is None
          else min(int(vmem_cap * 0.9), 112 * 1024 * 1024))
    vmem_limit = int(max(32 * 1024 * 1024,
                         min(int(est * 1.5) + (8 << 20), hi)))

    def full2d(shape):
        return pl.BlockSpec(shape, lambda b: (0, 0))

    kernel = functools.partial(self_attention_kernel, eps=eps,
                               c8p=c8p, kv_block=kv_block)

    out_flat = pl.pallas_call(
        kernel,
        out_shape=jax.ShapeDtypeStruct((B, HW, C), jnp.float32),
        grid=(B,),
        in_specs=[
            pl.BlockSpec((None, HW, C), lambda b: (b, 0, 0)),      # x (batch squeezed)
            full2d((C, qkv_w)), full2d((1, qkv_w)),                # fused qkv w, b
            full2d((C, C)), full2d((1, C)),                        # mlp fc1 w, b
            full2d((C, C)), full2d((1, C)),                        # mlp fc2 w, b
            full2d((HW, C)), full2d((HW, C)),                      # ln gamma, beta
        ],
        out_specs=pl.BlockSpec((None, HW, C), lambda b: (b, 0, 0)),
        compiler_params=pltpu.CompilerParams(
            dimension_semantics=("parallel",),
            vmem_limit_bytes=vmem_limit),
    )(x_flat, wqkv, bqkv, w1, params["b1"], w2, params["b2"],
      gamma_flat, beta_flat)

    # (B, HW, C) -> NCHW
    return jnp.transpose(out_flat.reshape(B, H, W, C), (0, 3, 1, 2))


def self_attention_ref(x_nchw, params, eps=1e-5):
    """Pure-JAX f32 reference mirroring the PyTorch forward exactly."""
    B, C, H, W = x_nchw.shape
    HW = H * W
    C8 = C // 8
    scale = float(C8) ** -0.5
    x = jnp.transpose(x_nchw, (0, 2, 3, 1)).reshape(B, HW, C)
    q = (x @ params["wq"] + params["bq"]) * scale
    k = x @ params["wk"] + params["bk"]
    v = x @ params["wv"] + params["bv"]
    logits = jnp.einsum("bic,bjc->bij", q, k)        # logits[i, j] = q_i . k_j
    attn = jax.nn.softmax(logits, axis=-2)           # softmax over the query axis i
    # torch: out = bmm(v, attn.permute(0,2,1)) -> out[i, c] = sum_j attn[i, j] v[j, c]
    out = jnp.einsum("bij,bjc->bic", attn, v)
    h = jax.nn.relu(out @ params["w1"] + params["b1"])
    mlp_out = h @ params["w2"] + params["b2"]
    res = mlp_out + x
    mu = jnp.mean(res, axis=(1, 2), keepdims=True)
    var = jnp.mean((res - mu) ** 2, axis=(1, 2), keepdims=True)
    g = jnp.transpose(params["ln_gamma"], (1, 2, 0)).reshape(HW, C)
    bb = jnp.transpose(params["ln_beta"], (1, 2, 0)).reshape(HW, C)
    y = (res - mu) / jnp.sqrt(var + eps) * g + bb
    return jnp.transpose(y.reshape(B, H, W, C), (0, 3, 1, 2))


def init_params(key, dim, H, W):
    C8 = dim // 8
    ks = jax.random.split(key, 10)
    s = 0.1
    return {
        # weights stored as (in, out) so the kernel does x @ w + b
        "wq": jax.random.normal(ks[0], (dim, C8), jnp.float32) * s,
        "bq": jax.random.normal(ks[1], (1, C8), jnp.float32) * s,
        "wk": jax.random.normal(ks[2], (dim, C8), jnp.float32) * s,
        "bk": jax.random.normal(ks[3], (1, C8), jnp.float32) * s,
        "wv": jax.random.normal(ks[4], (dim, dim), jnp.float32) * s,
        "bv": jax.random.normal(ks[5], (1, dim), jnp.float32) * s,
        "w1": jax.random.normal(ks[6], (dim, dim), jnp.float32) * s,
        "b1": jax.random.normal(ks[7], (1, dim), jnp.float32) * s,
        "w2": jax.random.normal(ks[8], (dim, dim), jnp.float32) * s,
        "b2": jax.random.normal(ks[9], (1, dim), jnp.float32) * s,
        # LayerNorm default init (ones / zeros), shape (C, H, W)
        "ln_gamma": jnp.ones((dim, H, W), jnp.float32),
        "ln_beta": jnp.zeros((dim, H, W), jnp.float32),
    }


if __name__ == "__main__":
    B, dim, H, W = 2, 32, 8, 8   # dim // 8 = 4
    key = jax.random.PRNGKey(0)
    kx, kp = jax.random.split(key)
    x = jax.random.normal(kx, (B, dim, H, W), jnp.float32)
    params = init_params(kp, dim, H, W)

    out = self_attention_pallas(x, params)
    out = jax.block_until_ready(out)

    ref = self_attention_ref(x, params)
    assert out.shape == (B, dim, H, W)
    # bf16 MXU operands, bf16 exp, and an approx reciprocal in the kernel vs an
    # f32 reference: tolerance relaxed accordingly (outputs are O(1) post-LN).
    assert jnp.allclose(out, ref, atol=7e-2, rtol=7e-2), (
        float(jnp.max(jnp.abs(out - ref))))

    print("KERNEL_OK")
</pallas_src>

<mosaic_0001>
module attributes {stable_mosaic.version = 11 : i64} {
  func.func @self_attention_kernel(%arg0: i32, %arg1: memref<1x64x32xf32, #tpu.memory_space<vmem>>, %arg2: memref<32x288xbf16, #tpu.memory_space<vmem>>, %arg3: memref<1x288xf32, #tpu.memory_space<vmem>>, %arg4: memref<32x32xbf16, #tpu.memory_space<vmem>>, %arg5: memref<1x32xf32, #tpu.memory_space<vmem>>, %arg6: memref<32x32xbf16, #tpu.memory_space<vmem>>, %arg7: memref<1x32xf32, #tpu.memory_space<vmem>>, %arg8: memref<64x32xf32, #tpu.memory_space<vmem>>, %arg9: memref<64x32xf32, #tpu.memory_space<vmem>>, %arg10: memref<1x64x32xf32, #tpu.memory_space<vmem>>) attributes {dimension_semantics = [#tpu.dimension_semantics<parallel>], iteration_bounds = array<i64: 2>, scalar_prefetch = 0 : i64, scratch_operands = 0 : i64, tpu.core_type = #tpu.core_type<tc>, window_params = [{transform_indices = @transform_0, window_bounds = array<i64: 1, 64, 32>}, {pipeline_mode = #tpu.pipeline_mode<synchronous>, transform_indices = @transform_1, window_bounds = array<i64: 32, 288>}, {pipeline_mode = #tpu.pipeline_mode<synchronous>, transform_indices = @transform_2, window_bounds = array<i64: 1, 288>}, {pipeline_mode = #tpu.pipeline_mode<synchronous>, transform_indices = @transform_3, window_bounds = array<i64: 32, 32>}, {pipeline_mode = #tpu.pipeline_mode<synchronous>, transform_indices = @transform_4, window_bounds = array<i64: 1, 32>}, {pipeline_mode = #tpu.pipeline_mode<synchronous>, transform_indices = @transform_5, window_bounds = array<i64: 32, 32>}, {pipeline_mode = #tpu.pipeline_mode<synchronous>, transform_indices = @transform_6, window_bounds = array<i64: 1, 32>}, {pipeline_mode = #tpu.pipeline_mode<synchronous>, transform_indices = @transform_7, window_bounds = array<i64: 64, 32>}, {pipeline_mode = #tpu.pipeline_mode<synchronous>, transform_indices = @transform_8, window_bounds = array<i64: 64, 32>}, {transform_indices = @transform_9, window_bounds = array<i64: 1, 64, 32>}]} {
    %c0 = arith.constant 0 : index
    %c0_0 = arith.constant 0 : index
    %c0_1 = arith.constant 0 : index
    %0 = vector.load %arg1[%c0, %c0_0, %c0_1] : memref<1x64x32xf32, #tpu.memory_space<vmem>>, vector<1x64x32xf32>
    %1 = vector.shape_cast %0 : vector<1x64x32xf32> to vector<64x32xf32>
    %2 = arith.truncf %1 : vector<64x32xf32> to vector<64x32xbf16>
    %c0_2 = arith.constant 0 : index
    %c0_3 = arith.constant 0 : index
    %3 = vector.load %arg2[%c0_2, %c0_3] : memref<32x288xbf16, #tpu.memory_space<vmem>>, vector<32x288xbf16>
    %cst = arith.constant dense<0.000000e+00> : vector<64x288xf32>
    %4 = tpu.matmul %2, %3, %cst {dimension_numbers = #tpu.dot_dimension_numbers<[1], [0], [0], [1], [0, 0, 1, 1], [], []>} : vector<64x32xbf16>, vector<32x288xbf16>, vector<64x288xf32> -> vector<64x288xf32>
    %c0_4 = arith.constant 0 : index
    %c0_5 = arith.constant 0 : index
    %5 = vector.load %arg3[%c0_4, %c0_5] : memref<1x288xf32, #tpu.memory_space<vmem>>, vector<1x288xf32>
    %6 = vector.broadcast %5 : vector<1x288xf32> to vector<64x288xf32>
    %7 = arith.addf %4, %6 : vector<64x288xf32>
    %8 = vector.extract_strided_slice %7 {offsets = [0, 0], sizes = [64, 128], strides = [1, 1]} : vector<64x288xf32> to vector<64x128xf32>
    %9 = arith.truncf %8 : vector<64x128xf32> to vector<64x128xbf16>
    %10 = vector.extract_strided_slice %7 {offsets = [0, 128], sizes = [64, 128], strides = [1, 1]} : vector<64x288xf32> to vector<64x128xf32>
    %11 = arith.truncf %10 : vector<64x128xf32> to vector<64x128xbf16>
    %12 = vector.extract_strided_slice %7 {offsets = [0, 256], sizes = [64, 32], strides = [1, 1]} : vector<64x288xf32> to vector<64x32xf32>
    %13 = arith.truncf %12 : vector<64x32xf32> to vector<64x32xbf16>
    %cst_6 = arith.constant dense<0.000000e+00> : vector<64x64xf32>
    %14 = tpu.matmul %9, %11, %cst_6 {dimension_numbers = #tpu.dot_dimension_numbers<[1], [1], [0], [0], [0, 0, 1, 0], [], []>} : vector<64x128xbf16>, vector<64x128xbf16>, vector<64x64xf32> -> vector<64x64xf32>
    %cst_7 = arith.constant dense<0xFF800000> : vector<64xf32>
    %15 = vector.multi_reduction <maximumf>, %14, %cst_7 [0] : vector<64x64xf32> to vector<64xf32>
    %16 = vector.shape_cast %15 : vector<64xf32> to vector<1x64xf32>
    %17 = vector.broadcast %16 : vector<1x64xf32> to vector<64x64xf32>
    %18 = arith.subf %14, %17 : vector<64x64xf32>
    %19 = arith.truncf %18 : vector<64x64xf32> to vector<64x64xbf16>
    %20 = math.exp %19 : vector<64x64xbf16>
    %21 = arith.extf %20 : vector<64x64xbf16> to vector<64x64xf32>
    %cst_8 = arith.constant dense<0.000000e+00> : vector<64xf32>
    %22 = vector.multi_reduction <add>, %21, %cst_8 [0] : vector<64x64xf32> to vector<64xf32>
    %23 = vector.shape_cast %22 : vector<64xf32> to vector<1x64xf32>
    %24 = tpu.reciprocal %23 {approx = true} : vector<1x64xf32> -> vector<1x64xf32>
    %25 = arith.truncf %24 : vector<1x64xf32> to vector<1x64xbf16>
    %26 = vector.broadcast %25 : vector<1x64xbf16> to vector<64x64xbf16>
    %27 = arith.mulf %20, %26 : vector<64x64xbf16>
    %cst_9 = arith.constant dense<0.000000e+00> : vector<64x32xf32>
    %28 = tpu.matmul %27, %13, %cst_9 {dimension_numbers = #tpu.dot_dimension_numbers<[1], [0], [0], [1], [0, 0, 1, 1], [], []>} : vector<64x64xbf16>, vector<64x32xbf16>, vector<64x32xf32> -> vector<64x32xf32>
    %29 = arith.truncf %28 : vector<64x32xf32> to vector<64x32xbf16>
    %c0_10 = arith.constant 0 : index
    %c0_11 = arith.constant 0 : index
    %30 = vector.load %arg4[%c0_10, %c0_11] : memref<32x32xbf16, #tpu.memory_space<vmem>>, vector<32x32xbf16>
    %cst_12 = arith.constant dense<0.000000e+00> : vector<64x32xf32>
    %31 = tpu.matmul %29, %30, %cst_12 {dimension_numbers = #tpu.dot_dimension_numbers<[1], [0], [0], [1], [0, 0, 1, 1], [], []>} : vector<64x32xbf16>, vector<32x32xbf16>, vector<64x32xf32> -> vector<64x32xf32>
    %c0_13 = arith.constant 0 : index
    %c0_14 = arith.constant 0 : index
    %32 = vector.load %arg5[%c0_13, %c0_14] : memref<1x32xf32, #tpu.memory_space<vmem>>, vector<1x32xf32>
    %33 = vector.broadcast %32 : vector<1x32xf32> to vector<64x32xf32>
    %34 = arith.addf %31, %33 : vector<64x32xf32>
    %cst_15 = arith.constant 0.000000e+00 : f32
    %35 = vector.broadcast %cst_15 : f32 to vector<64x32xf32>
    %36 = arith.maximumf %34, %35 : vector<64x32xf32>
    %37 = arith.truncf %36 : vector<64x32xf32> to vector<64x32xbf16>
    %c0_16 = arith.constant 0 : index
    %c0_17 = arith.constant 0 : index
    %38 = vector.load %arg6[%c0_16, %c0_17] : memref<32x32xbf16, #tpu.memory_space<vmem>>, vector<32x32xbf16>
    %cst_18 = arith.constant dense<0.000000e+00> : vector<64x32xf32>
    %39 = tpu.matmul %37, %38, %cst_18 {dimension_numbers = #tpu.dot_dimension_numbers<[1], [0], [0], [1], [0, 0, 1, 1], [], []>} : vector<64x32xbf16>, vector<32x32xbf16>, vector<64x32xf32> -> vector<64x32xf32>
    %c0_19 = arith.constant 0 : index
    %c0_20 = arith.constant 0 : index
    %40 = vector.load %arg7[%c0_19, %c0_20] : memref<1x32xf32, #tpu.memory_space<vmem>>, vector<1x32xf32>
    %41 = vector.broadcast %40 : vector<1x32xf32> to vector<64x32xf32>
    %42 = arith.addf %39, %41 : vector<64x32xf32>
    %43 = arith.addf %42, %1 : vector<64x32xf32>
    %44 = vector.shape_cast %43 : vector<64x32xf32> to vector<1x64x32xf32>
    %cst_21 = arith.constant dense<0.000000e+00> : vector<1xf32>
    %45 = vector.multi_reduction <add>, %44, %cst_21 [1, 2] : vector<1x64x32xf32> to vector<1xf32>
    %46 = vector.shape_cast %45 : vector<1xf32> to vector<1x1x1xf32>
    %47 = vector.extract %46[0, 0, 0] : f32 from vector<1x1x1xf32>
    %cst_22 = arith.constant 4.8828125E-4 : f32
    %48 = arith.mulf %47, %cst_22 : f32
    %49 = arith.mulf %43, %43 : vector<64x32xf32>
    %50 = vector.shape_cast %49 : vector<64x32xf32> to vector<1x64x32xf32>
    %cst_23 = arith.constant dense<0.000000e+00> : vector<1xf32>
    %51 = vector.multi_reduction <add>, %50, %cst_23 [1, 2] : vector<1x64x32xf32> to vector<1xf32>
    %52 = vector.shape_cast %51 : vector<1xf32> to vector<1x1x1xf32>
    %53 = vector.extract %52[0, 0, 0] : f32 from vector<1x1x1xf32>
    %cst_24 = arith.constant 4.8828125E-4 : f32
    %54 = arith.mulf %53, %cst_24 : f32
    %55 = arith.mulf %48, %48 : f32
    %56 = arith.subf %54, %55 : f32
    %cst_25 = arith.constant 9.99999974E-6 : f32
    %57 = arith.addf %56, %cst_25 : f32
    %58 = math.rsqrt %57 : f32
    %59 = vector.broadcast %48 : f32 to vector<64x32xf32>
    %60 = arith.subf %43, %59 : vector<64x32xf32>
    %61 = vector.broadcast %58 : f32 to vector<64x32xf32>
    %62 = arith.mulf %60, %61 : vector<64x32xf32>
    %c0_26 = arith.constant 0 : index
    %c0_27 = arith.constant 0 : index
    %63 = vector.load %arg8[%c0_26, %c0_27] : memref<64x32xf32, #tpu.memory_space<vmem>>, vector<64x32xf32>
    %64 = arith.mulf %62, %63 : vector<64x32xf32>
    %c0_28 = arith.constant 0 : index
    %c0_29 = arith.constant 0 : index
    %65 = vector.load %arg9[%c0_28, %c0_29] : memref<64x32xf32, #tpu.memory_space<vmem>>, vector<64x32xf32>
    %66 = arith.addf %64, %65 : vector<64x32xf32>
    %c0_30 = arith.constant 0 : index
    %c0_31 = arith.constant 0 : index
    %c0_32 = arith.constant 0 : index
    %67 = vector.load %arg10[%c0_30, %c0_31, %c0_32] : memref<1x64x32xf32, #tpu.memory_space<vmem>>, vector<1x64x32xf32>
    %68 = vector.shape_cast %67 : vector<1x64x32xf32> to vector<64x32xf32>
    %69 = vector.shape_cast %66 : vector<64x32xf32> to vector<1x64x32xf32>
    tpu.vector_store %arg10[%c0_30, %c0_31, %c0_32], %69 {strides = array<i32>} : memref<1x64x32xf32, #tpu.memory_space<vmem>>, vector<1x64x32xf32>,
    return
  }
  func.func @transform_0(%arg0: i32) -> (i32, i32, i32) {
    %c0_i32 = arith.constant 0 : i32
    %c0_i32_0 = arith.constant 0 : i32
    %c0_i32_1 = arith.constant 0 : i32
    return %arg0, %c0_i32, %c0_i32_0 : i32, i32, i32
  }
  func.func @transform_1(%arg0: i32) -> (i32, i32) {
    %c0_i32 = arith.constant 0 : i32
    %c0_i32_0 = arith.constant 0 : i32
    %c0_i32_1 = arith.constant 0 : i32
    return %c0_i32, %c0_i32_0 : i32, i32
  }
  func.func @transform_2(%arg0: i32) -> (i32, i32) {
    %c0_i32 = arith.constant 0 : i32
    %c0_i32_0 = arith.constant 0 : i32
    %c0_i32_1 = arith.constant 0 : i32
    return %c0_i32, %c0_i32_0 : i32, i32
  }
  func.func @transform_3(%arg0: i32) -> (i32, i32) {
    %c0_i32 = arith.constant 0 : i32
    %c0_i32_0 = arith.constant 0 : i32
    %c0_i32_1 = arith.constant 0 : i32
    return %c0_i32, %c0_i32_0 : i32, i32
  }
  func.func @transform_4(%arg0: i32) -> (i32, i32) {
    %c0_i32 = arith.constant 0 : i32
    %c0_i32_0 = arith.constant 0 : i32
    %c0_i32_1 = arith.constant 0 : i32
    return %c0_i32, %c0_i32_0 : i32, i32
  }
  func.func @transform_5(%arg0: i32) -> (i32, i32) {
    %c0_i32 = arith.constant 0 : i32
    %c0_i32_0 = arith.constant 0 : i32
    %c0_i32_1 = arith.constant 0 : i32
    return %c0_i32, %c0_i32_0 : i32, i32
  }
  func.func @transform_6(%arg0: i32) -> (i32, i32) {
    %c0_i32 = arith.constant 0 : i32
    %c0_i32_0 = arith.constant 0 : i32
    %c0_i32_1 = arith.constant 0 : i32
    return %c0_i32, %c0_i32_0 : i32, i32
  }
  func.func @transform_7(%arg0: i32) -> (i32, i32) {
    %c0_i32 = arith.constant 0 : i32
    %c0_i32_0 = arith.constant 0 : i32
    %c0_i32_1 = arith.constant 0 : i32
    return %c0_i32, %c0_i32_0 : i32, i32
  }
  func.func @transform_8(%arg0: i32) -> (i32, i32) {
    %c0_i32 = arith.constant 0 : i32
    %c0_i32_0 = arith.constant 0 : i32
    %c0_i32_1 = arith.constant 0 : i32
    return %c0_i32, %c0_i32_0 : i32, i32
  }
  func.func @transform_9(%arg0: i32) -> (i32, i32, i32) {
    %c0_i32 = arith.constant 0 : i32
    %c0_i32_0 = arith.constant 0 : i32
    %c0_i32_1 = arith.constant 0 : i32
    return %arg0, %c0_i32, %c0_i32_0 : i32, i32, i32
  }
}

</mosaic_0001>

<bundles_post_ra>
// kernel: tpu_custom_call.1
= control target key start
LH: loop header
LB: loop body
LE: loop exit
PB: predicated region body
PF: predicated region fallthrough
CT: control target
= control target key end

     0   :  { %s1209_s30 = smov 0   ;;  %s1502_s0 = inlined_call_operand.vmem [shape: f32[2,64,32], index: 0, kind: input, shape index: {}]   ;;  %s1503_s1 = inlined_call_operand.vmem [shape: bf16[32,288], index: 1, kind: input, shape index: {}]   ;;  %s1504_s2 = inlined_call_operand.vmem [shape: f32[1,288], index: 2, kind: input, shape index: {}]   ;;  %s1505_s3 = inlined_call_operand.vmem [shape: bf16[32,32], index: 3, kind: input, shape index: {}]   ;;  %s1506_s4 = inlined_call_operand.vmem [shape: f32[1,32], index: 4, kind: input, shape index: {}]   ;;  %s1507_s5 = inlined_call_operand.vmem [shape: bf16[32,32], index: 5, kind: input, shape index: {}]   ;;  %s1508_s6 = inlined_call_operand.vmem [shape: f32[1,32], index: 6, kind: input, shape index: {}]   ;;  %s1509_s7 = inlined_call_operand.vmem [shape: f32[64,32], index: 7, kind: input, shape index: {}]   ;;  %s1510_s8 = inlined_call_operand.vmem [shape: f32[64,32], index: 8, kind: input, shape index: {}]   ;;  %s1511_s9 = inlined_call_operand.vmem [shape: f32[2,64,32], index: 9, kind: output, shape index: {}]  }
   0x1 LB: > { %s1022_s10 = sadd.s32 4294967295, %s1157_s30   ;;  %p1026_p0 = scmp.ge.s32.totalorder %s1157_s30, 1  ;;  %s1157_s30 = sphi %s1209_s30, %s19_s30  }
   0x2   : > { %p287_p1 = scmp.lt.s32.totalorder %s1157_s30, 3 }
   0x4   : > { %p288_p2 = pnand %p1026_p0, %p287_p1 }
   0x5   : > { %p323_p3 = scmp.lt.s32.totalorder (!%p288_p2), %s1022_s10, 1 }
   0x6   : > { %291 = sbr.rel (%p288_p2) target bundleno = 1238 (0x4d6), region = 56 }
   0xb   : > { %v1102_v0 = vld [vmem:[%s1503_s1 + $0x1c] sm:$0xf]  ;;  %v1047_v1 = vld [vmem:[%s1503_s1 + $0x24] sm:$0xf0]  ;;  %v1099_v2 = vld [vmem:[%s1503_s1 + $0x4] sm:$0xf] }
   0xc   : > { %v1050_v3 = vor.u32 %v1102_v0, %v1047_v1  ;;  %v1035_v4 = vld [vmem:[%s1503_s1 + $0xc] sm:$0xf0]  ;;  %v1045_v5 = vld [vmem:[%s1503_s1 + $0x18] sm:$0xf]  ;;  %v1103_v6 = vld [vmem:[%s1503_s1 + $0x20] sm:$0xf0] }
   0xd   : > { %v1038_v7 = vor.u32 %v1099_v2, %v1035_v4  ;;  %s1513_s10 = smov (!%p323_p3, %s1022_s10), 1  ;;  %v1046_v8 = vor.u32 %v1103_v6, %v1045_v5  ;;  %v1033_v9 = vld [vmem:[%s1503_s1] sm:$0xf]  ;;  %v1100_v10 = vld [vmem:[%s1503_s1 + $0x8] sm:$0xf0]  ;;  %vm394_vm0 = vcmask 261120  }
   0xe   : > { %1111 = vmatpush.bf16.msra.mxu1 %v1050_v3  ;;  %s1097_s27 = sshll.u32 %s1513_s10, 6  ;;  %v1034_v11 = vor.u32 %v1100_v10, %v1033_v9  ;;  %v1288_v30 = vld [vmem:[%s1504_s2] sm:$0x7]  ;;  %v1104_v48 = vld [vmem:[%s1503_s1 + $0x28] sm:$0xf0]  ;;  %vm535_vm1 = vcmask 523264  }
   0xf   : > { %413 = vmatpush.bf16.msra.mxu0 %v1046_v8  ;;  %1109 = vmatpush.bf16.msra.mxu3 %v1046_v8  ;;  %s327_s11 = scalar_lea.vmem %s1502_s0, %s1097_s27  ;;  %v357_v31 = vperm.slane %v1288_v30, 1  ;;  %v1053_v47 = vld [vmem:[%s1503_s1 + $0x20] sm:$0xf]  ;;  %v356_v51 = vperm.slane %v1288_v30, 0  ;;  %v1041_v53 = vld [vmem:[%s1503_s1 + $0x8] sm:$0xf]  ;;  %s332_s14 = scalar_lea.vmem %s1511_s9, %s1097_s27 }
  0x10   : > { %v1249_v12 = vld [vmem:[%s327_s11 + $0x10] sm:$0xff]  ;;  %v1251_v13 = vld [vmem:[%s327_s11 + $0x18] sm:$0xff]  ;;  %v1257_v15 = vld [vmem:[%s327_s11] sm:$0xff]  ;;  %v1054_v49 = vor.u32 %v1104_v48, %v1053_v47 }
  0x11   : > { %v1255_v14 = vpack.c.bf16 %v1251_v13, %v1249_v12  ;;  %v1259_v16 = vld [vmem:[%s327_s11 + $0x8] sm:$0xff]  ;;  %v1268_v18 = vld [vmem:[%s327_s11 + $0x20] sm:$0xff]  ;;  %v1277_v21 = vld [vmem:[%s327_s11 + $0x30] sm:$0xff] }
  0x12   : > { %1112 = vmatpush.bf16.msra.mxu1 %v1038_v7  ;;  %v342_v17 = vpack.c.bf16 %v1259_v16, %v1257_v15  ;;  %v1270_v19 = vld [vmem:[%s327_s11 + $0x28] sm:$0xff]  ;;  %v1279_v22 = vld [vmem:[%s327_s11 + $0x38] sm:$0xff]  ;;  %1113 = vmatpush.bf16.msra.mxu2 %v1054_v49  ;;  %v1101_v54 = vld [vmem:[%s1503_s1 + $0x10] sm:$0xf0] }
  0x13   : > { %414 = vmatpush.bf16.msra.mxu0 %v1034_v11  ;;  %1110 = vmatpush.bf16.msra.mxu3 %v1034_v11  ;;  %v344_v20 = vpack.c.bf16 %v1270_v19, %v1268_v18  ;;  %v345_v23 = vpack.c.bf16 %v1279_v22, %v1277_v21  ;;  %v1042_v55 = vor.u32 %v1101_v54, %v1041_v53 }
  0x15   : > { %1060 = vmatmul.msk.bf16.vlgmr.msra.gmra.mxu1 %vm394_vm0, %v1255_v14 }
  0x16   : > { %1055 = vmatmul.msk.bf16.vlgmr.msra.gmra.mxu0 %vm394_vm0, %v342_v17  ;;  %1056 = vmatmul.msk.bf16.vlgmr.msra.gmra.mxu3 %vm394_vm0, %v1255_v14 }
  0x17   : > { %442 = vmatpush.bf16.msrb.mxu0 %v1050_v3  ;;  %1114 = vmatpush.bf16.msra.mxu2 %v1042_v55 }
  0x1a   : > { %1064 = vmatmul.msk.bf16.vlgmr.msra.gmra.mxu2 %vm394_vm0, %v1255_v14 }
  0x1b   : > { %443 = vmatpush.bf16.msrb.mxu0 %v1038_v7 }
  0x1f   : > { %471 = vmatpush.bf16.msra.mxu0 %v1054_v49 }
  0x23   : > { %472 = vmatpush.bf16.msra.mxu0 %v1042_v55 }
  0x25   : > { %1061 = vmatmul.msk.bf16.gmra.mxu1 %vm394_vm0, %v344_v20 }
  0x26   : > { %1059 = vmatmul.msk.bf16.vlgmr.msrb.gmra.mxu0 %vm394_vm0, %v342_v17  ;;  %1057 = vmatmul.msk.bf16.gmra.mxu3 %vm394_vm0, %v344_v20 }
  0x2a   : > { %1065 = vmatmul.msk.bf16.gmra.mxu2 %vm394_vm0, %v344_v20 }
  0x35   : > { %1062 = vmatmul.msk.bf16.gmra.mxu1 %vm394_vm0, %v345_v23 }
  0x36   : > { %1058 = vmatmul.msk.bf16.gmra.mxu3 %vm394_vm0, %v345_v23  ;;  %1063 = vmatmul.msk.bf16.vlgmr.msra.gmra.mxu0 %vm394_vm0, %v342_v17 }
  0x3a   : > { %1066 = vmatmul.msk.bf16.gmra.mxu2 %vm394_vm0, %v345_v23  ;;  %v1310_v23 = vperm.slane %v1288_v30, 2 }
  0x92   : > { %v450_v24 = vpop.f32.mrf.mxu1 }
  0x93   : > { %v416_v28 = vpop.f32.mrf.mxu0  ;;  %v451_v42 = vadd.f32 %v450_v24, %v357_v31 }
  0x94   : > { %v417_v56 = vadd.f32 %v416_v28, %v356_v51 }
  0x99   : > { %v421_v50 = vpop.f32.mrf.mxu3 }
  0x9a   : > { %v452_v25 = vpop.f32.mrf.mxu1  ;;  %v422_v61 = vadd.f32 %v421_v50, %v356_v51 }
  0x9b   : > { %v418_v33 = vpop.f32.mrf.mxu0  ;;  %v453_v41 = vadd.f32 %v452_v25, %v357_v31 }
  0x9c   : > { %v419_v57 = vadd.f32 %v418_v33, %v356_v51 }
  0x9d   : > { %v499_v43 = vpack.c.bf16 %v453_v41, %v451_v42  ;;  %v479_v10 = vpop.f32.mrf.mxu2 }
  0x9e   : > { %v494_v58 = vpack.c.bf16 %v419_v57, %v417_v56 }
  0xa1   : > { %v423_v59 = vpop.f32.mrf.mxu3 }
  0xa2   : > { %v455_v26 = vpop.f32.mrf.mxu1  ;;  %v424_v62 = vadd.f32 %v423_v59, %v356_v51 }
  0xa3   : > { %v456_v38 = vadd.f32 %v455_v26, %v357_v31  ;;  %v445_v39 = vpop.f32.mrf.mxu0 }
  0xa4   : > { %v446_v45 = vadd.f32 %v445_v39, %v357_v31  ;;  %v495_v63 = vpack.c.bf16 %v424_v62, %v422_v61 }
  0xa5   : > { %v481_v14 = vpop.f32.mrf.mxu2 }
  0xa9   : > { %v426_v60 = vpop.f32.mrf.mxu3 }
  0xaa   : > { %v457_v27 = vpop.f32.mrf.mxu1  ;;  %v427_v1 = vadd.f32 %v426_v60, %v356_v51 }
  0xab   : > { %v458_v37 = vadd.f32 %v457_v27, %v357_v31  ;;  %v447_v44 = vpop.f32.mrf.mxu0 }
  0xac   : > { %v448_v46 = vadd.f32 %v447_v44, %v357_v31 }
  0xad   : > { %v500_v40 = vpack.c.bf16 %v458_v37, %v456_v38  ;;  %v484_v20 = vpop.f32.mrf.mxu2 }
  0xae   : > { %v498_v52 = vpack.c.bf16 %v448_v46, %v446_v45  ;;  %v485_v37 = vadd.f32 %v484_v20, %v1310_v23 }
  0xb1   : > { %v428_v0 = vpop.f32.mrf.mxu3 }
  0xb2   : > { %v460_v29 = vpop.f32.mrf.mxu1  ;;  %v429_v2 = vadd.f32 %v428_v0, %v356_v51 }
  0xb3   : > { %v461_v34 = vadd.f32 %v460_v29, %v357_v31 }
  0xb4   : > { %v496_v4 = vpack.c.bf16 %v429_v2, %v427_v1 }
  0xb5   : > { %v486_v25 = vpop.f32.mrf.mxu2 }
  0xb6   : > { %v487_v38 = vadd.f32 %v486_v25, %v1310_v23 }
  0xb8   : > { %v504_v39 = vpack.c.bf16 %v487_v38, %v485_v37 }
  0xb9   : > { %v431_v3 = vpop.f32.mrf.mxu3 }
  0xba   : > { %v462_v32 = vpop.f32.mrf.mxu1  ;;  %v432_v6 = vadd.f32 %v431_v3, %v356_v51 }
  0xbb   : > { %v463_v35 = vadd.f32 %v462_v32, %v357_v31 }
  0xbd   : > { %v501_v36 = vpack.c.bf16 %v463_v35, %v461_v34  ;;  %v489_v27 = vpop.f32.mrf.mxu2  ;;  %v480_v35 = vadd.f32 %v479_v10, %v1310_v23 }
  0xbe   : > { %v490_v31 = vadd.f32 %v489_v27, %v1310_v23 }
  0xbf   : > { %510 = vmatpush.bf16.xpose.msrb.mxu3 %v501_v36  ;;  %v482_v36 = vadd.f32 %v481_v14, %v1310_v23 }
  0xc1   : > { %v433_v5 = vpop.f32.mrf.mxu3 }
  0xc2   : > { %v434_v7 = vadd.f32 %v433_v5, %v356_v51 }
  0xc4   : > { %v497_v8 = vpack.c.bf16 %v434_v7, %v432_v6 }
  0xc5   : > { %v491_v29 = vpop.f32.mrf.mxu2 }
  0xc6   : > { %v492_v32 = vadd.f32 %v491_v29, %v1310_v23 }
  0xc7   : > { %511 = vmatpush.bf16.xpose.msrb.mxu3 %v500_v40  ;;  %v503_v40 = vpack.c.bf16 %v482_v36, %v480_v35 }
  0xc8   : > { %v505_v33 = vpack.c.bf16 %v492_v32, %v490_v31 }
  0xca   : > { %665 = vmatpush.bf16.msrb.mxu0 %v505_v33 }
  0xce   : > { %666 = vmatpush.bf16.msrb.mxu0 %v504_v39 }
  0xcf   : > { %512 = vmatpush.bf16.xpose.msrb.mxu3 %v499_v43 }
  0xd2   : > { %667 = vmatpush.bf16.msrb.mxu0 %v503_v40 }
  0xd7   : > { %513 = vmatpush.bf16.xpose.msrb.mxu3 %v498_v52 }
  0xde   : > { %514 = vmatmul.bf16.vlgmr.msrb.gmra.mxu3 %v494_v58 }
  0xee   : > { %519 = vmatmul.bf16.gmra.mxu3 %v495_v63 }
  0xfe   : > { %524 = vmatmul.bf16.gmra.mxu3 %v496_v4 }
 0x10e   : > { %529 = vmatmul.bf16.gmra.mxu3 %v497_v8 }
 0x161   : > { %v515_v9 = vpop.f32.mrf.mxu3 }
 0x162   : > { %v536_v46 = vsel %vm535_vm1, %v515_v9, -inf }
 0x169   : > { %v517_v11 = vpop.f32.mrf.mxu3 }
 0x16a   : > { %v537_v41 = vsel %vm535_vm1, %v517_v11, -inf }
 0x171   : > { %v520_v17 = vpop.f32.mrf.mxu3 }
 0x172   : > { %v538_v47 = vsel %vm535_vm1, %v520_v17, -inf }
 0x179   : > { %v522_v24 = vpop.f32.mrf.mxu3 }
 0x17a   : > { %v539_v48 = vsel %vm535_vm1, %v522_v24, -inf }
 0x181   : > { %v525_v26 = vpop.f32.mrf.mxu3 }
 0x182   : > { %v540_v42 = vsel %vm535_vm1, %v525_v26, -inf }
 0x183   : > { %v541_v50 = vmax.f32 %v536_v46, %v540_v42 }
 0x189   : > { %v527_v28 = vpop.f32.mrf.mxu3 }
 0x18a   : > { %v542_v30 = vsel %vm535_vm1, %v527_v28, -inf }
 0x18b   : > { %v543_v44 = vmax.f32 %v537_v41, %v542_v30  ;;  %v474_v30 = vpop.f32.mrf.mxu0 }
 0x18d   : > { %v548_v53 = vmax.f32 %v541_v50, %v543_v44 }
 0x191   : > { %v530_v34 = vpop.f32.mrf.mxu3 }
 0x192   : > { %v544_v43 = vsel %vm535_vm1, %v530_v34, -inf }
 0x193   : > { %v545_v51 = vmax.f32 %v538_v47, %v544_v43 }
 0x199   : > { %v532_v45 = vpop.f32.mrf.mxu3 }
 0x19a   : > { %v546_v49 = vsel %vm535_vm1, %v532_v45, -inf }
 0x19b   : > { %v547_v52 = vmax.f32 %v539_v48, %v546_v49 }
 0x19d   : > { %v549_v54 = vmax.f32 %v545_v51, %v547_v52 }
 0x19f   : > { %v550_v55 = vmax.f32 %v548_v53, %v549_v54 }
 0x1a1   : > { %v551_v56 = vrot.slane %v550_v55, 4 }
 0x1a3   : > { %v552_v57 = vmax.f32 %v550_v55, %v551_v56 }
 0x1a5   : > { %v553_v58 = vrot.slane %v552_v57, 2 }
 0x1a7   : > { %v554_v59 = vmax.f32 %v552_v57, %v553_v58 }
 0x1a9   : > { %v555_v60 = vrot.slane %v554_v59, 1 }
 0x1ab   : > { %v556_v61 = vmax.f32 %v554_v59, %v555_v60  ;;  %v476_v59 = vpop.f32.mrf.mxu0 }
 0x1ad   : > { %v557_v62 = vsub.f32 %v515_v9, %v556_v61  ;;  %v558_v63 = vsub.f32 %v517_v11, %v556_v61  ;;  %v559_v0 = vsub.f32 %v520_v17, %v556_v61  ;;  %v560_v1 = vsub.f32 %v522_v24, %v556_v61 }
 0x1ae   : > { %v561_v2 = vsub.f32 %v525_v26, %v556_v61  ;;  %v562_v3 = vsub.f32 %v527_v28, %v556_v61  ;;  %v563_v4 = vsub.f32 %v530_v34, %v556_v61  ;;  %v564_v5 = vsub.f32 %v532_v45, %v556_v61 }
 0x1af   : > { %v565_v6 = vpack.c.bf16 %v557_v62, %v557_v62  ;;  %v566_v7 = vpack.c.bf16 %v558_v63, %v558_v63  ;;  %v567_v8 = vpack.c.bf16 %v559_v0, %v559_v0  ;;  %v568_v10 = vpack.c.bf16 %v560_v1, %v560_v1 }
 0x1b0   : > { %v569_v14 = vpack.c.bf16 %v561_v2, %v561_v2  ;;  %v570_v20 = vpack.c.bf16 %v562_v3, %v562_v3  ;;  %v571_v25 = vpack.c.bf16 %v563_v4, %v563_v4  ;;  %v572_v27 = vpack.c.bf16 %v564_v5, %v564_v5 }
 0x1b1   : > { %v573_v29 = vunpack.c.l.bf16 %v565_v6  ;;  %v574_v31 = vunpack.c.l.bf16 %v566_v7  ;;  %v575_v32 = vunpack.c.l.bf16 %v567_v8  ;;  %v576_v33 = vunpack.c.l.bf16 %v568_v10 }
 0x1b2   : > { %v577_v9 = vunpack.c.l.bf16 %v569_v14  ;;  %v578_v11 = vunpack.c.l.bf16 %v570_v20  ;;  %v579_v17 = vunpack.c.l.bf16 %v571_v25  ;;  %v580_v34 = vunpack.c.l.bf16 %v572_v27 }
 0x1b3   : > { %v581_v24 = vmul.f32 1.442695, %v573_v29  ;;  %v583_v26 = vmul.f32 1.442695, %v574_v31  ;;  %v585_v28 = vmul.f32 1.442695, %v575_v32  ;;  %v475_v1 = vadd.f32 %v474_v30, %v1310_v23 }
 0x1b4   : > { %v587_v35 = vmul.f32 1.442695, %v576_v33  ;;  %v589_v36 = vmul.f32 1.442695, %v577_v9  ;;  %v591_v37 = vmul.f32 1.442695, %v578_v11  ;;  %v477_v3 = vadd.f32 %v476_v59, %v1310_v23 }
 0x1b5   : > { %1131 = vpow2.f32 %v581_v24  ;;  %v593_v38 = vmul.f32 1.442695, %v579_v17  ;;  %v595_v39 = vmul.f32 1.442695, %v580_v34 }
 0x1b6   : > { %1133 = vpow2.f32 %v583_v26  ;;  %v502_v8 = vpack.c.bf16 %v477_v3, %v475_v1  ;;  %v1129_v1 = vld [vmem:[%s1506_s4] ss:$0 sm:$0xff] }
 0x1b7   : > { %1135 = vpow2.f32 %v585_v28 }
 0x1b8   : > { %1137 = vpow2.f32 %v587_v35  ;;  %668 = vmatpush.bf16.msrb.mxu0 %v502_v8 }
 0x1b9   : > { %1139 = vpow2.f32 %v589_v36 }
 0x1ba   : > { %1141 = vpow2.f32 %v591_v37 }
 0x1bb   : > { %v1132_v40 = vpop.eup %1131  ;;  %1143 = vpow2.f32 %v593_v38 }
 0x1bc   : > { %v1134_v41 = vpop.eup %1133  ;;  %1145 = vpow2.f32 %v595_v39  ;;  %v597_v42 = vpack.c.bf16 %v1132_v40, %v1132_v40 }
 0x1bd   : > { %v1136_v43 = vpop.eup %1135  ;;  %v598_v44 = vpack.c.bf16 %v1134_v41, %v1134_v41 }
 0x1be   : > { %v1138_v45 = vpop.eup %1137  ;;  %v599_v46 = vpack.c.bf16 %v1136_v43, %v1136_v43  ;;  %v605_v47 = vunpack.c.l.bf16 %v597_v42 }
 0x1bf   : > { %v1140_v48 = vpop.eup %1139  ;;  %v600_v49 = vpack.c.bf16 %v1138_v45, %v1138_v45  ;;  %v606_v50 = vunpack.c.l.bf16 %v598_v44 }
 0x1c0   : > { %v1142_v51 = vpop.eup %1141  ;;  %v601_v52 = vpack.c.bf16 %v1140_v48, %v1140_v48  ;;  %v607_v53 = vunpack.c.l.bf16 %v599_v46  ;;  %v613_v54 = vsel %vm535_vm1, %v605_v47, 0.0 }
 0x1c1   : > { %v1144_v55 = vpop.eup %1143  ;;  %v602_v56 = vpack.c.bf16 %v1142_v51, %v1142_v51  ;;  %v608_v57 = vunpack.c.l.bf16 %v600_v49  ;;  %v614_v58 = vsel %vm535_vm1, %v606_v50, 0.0  ;;  %v1106_v49 = vld [vmem:[%s1505_s3 + $0x8] sm:$0xff] }
 0x1c2   : > { %v1146_v60 = vpop.eup %1145  ;;  %v615_v61 = vadd.f32 %v614_v58, %v613_v54  ;;  %v603_v62 = vpack.c.bf16 %v1144_v55, %v1144_v55  ;;  %v609_v63 = vunpack.c.l.bf16 %v601_v52  ;;  %v616_v0 = vsel %vm535_vm1, %v607_v53, 0.0  ;;  %732 = vmatpush.bf16.msrb.mxu1 %v1106_v49 }
 0x1c3   : > { %v604_v4 = vpack.c.bf16 %v1146_v60, %v1146_v60  ;;  %v610_v5 = vunpack.c.l.bf16 %v602_v56  ;;  %v618_v6 = vsel %vm535_vm1, %v608_v57, 0.0  ;;  %v1108_v56 = vld [vmem:[%s1507_s5 + $0x8] sm:$0xff] }
 0x1c4   : > { %v617_v2 = vadd.f32 %v616_v0, %v615_v61  ;;  %v611_v10 = vunpack.c.l.bf16 %v603_v62  ;;  %v620_v14 = vsel %vm535_vm1, %v609_v63, 0.0  ;;  %805 = vmatpush.bf16.msrb.mxu2 %v1108_v56 }
 0x1c5   : > { %v612_v25 = vunpack.c.l.bf16 %v604_v4  ;;  %v622_v27 = vsel %vm535_vm1, %v610_v5, 0.0 }
 0x1c6   : > { %v619_v7 = vadd.f32 %v618_v6, %v617_v2  ;;  %v624_v31 = vsel %vm535_vm1, %v611_v10, 0.0 }
 0x1c7   : > { %v626_v23 = vsel %vm535_vm1, %v612_v25, 0.0 }
 0x1c8   : > { %v621_v20 = vadd.f32 %v620_v14, %v619_v7 }
 0x1ca   : > { %v623_v29 = vadd.f32 %v622_v27, %v621_v20 }
 0x1cc   : > { %v625_v32 = vadd.f32 %v624_v31, %v623_v29 }
 0x1ce   : > { %v627_v33 = vadd.f32 %v626_v23, %v625_v32 }
 0x1d0   : > { %v628_v9 = vrot.slane %v627_v33, 4 }
 0x1d2   : > { %v629_v11 = vadd.f32 %v628_v9, %v627_v33 }
 0x1d4   : > { %v630_v17 = vrot.slane %v629_v11, 2 }
 0x1d6   : > { %v631_v24 = vadd.f32 %v630_v17, %v629_v11 }
 0x1d8   : > { %v632_v26 = vrot.slane %v631_v24, 1 }
 0x1da   : > { %v633_v28 = vadd.f32 %v632_v26, %v631_v24 }
 0x1dc   : > { %1147 = vrcp.f32 %v633_v28 }
 0x1e2   : > { %v1148_v34 = vpop.eup %1147 }
 0x1e3   : > { %v635_v35 = vpack.c.bf16 %v1148_v34, %v1148_v34 }
 0x1e5   : > { %v636_v36 = vunpack.c.l.bf16 %v635_v35 }
 0x1e7   : > { %v637_v37 = vmul.f32 %v636_v36, %v605_v47  ;;  %v638_v38 = vmul.f32 %v636_v36, %v606_v50  ;;  %v641_v39 = vmul.f32 %v636_v36, %v609_v63  ;;  %v642_v30 = vmul.f32 %v636_v36, %v610_v5  ;;  %v1105_v47 = vld [vmem:[%s1505_s3] sm:$0xff] }
 0x1e8   : > { %v643_v40 = vmul.f32 %v636_v36, %v611_v10  ;;  %v644_v41 = vmul.f32 %v636_v36, %v612_v25  ;;  %v639_v45 = vmul.f32 %v636_v36, %v607_v53  ;;  %v640_v46 = vmul.f32 %v636_v36, %v608_v57  ;;  %733 = vmatpush.bf16.msrb.mxu1 %v1105_v47  ;;  %v1107_v63 = vld [vmem:[%s1507_s5] sm:$0xff] }
 0x1e9   : > { %v645_v42 = vpack.c.bf16 %v638_v38, %v637_v37  ;;  %v647_v43 = vpack.c.bf16 %v642_v30, %v641_v39  ;;  %806 = vmatpush.bf16.msrb.mxu2 %v1107_v63 }
 0x1ea   : > { %v648_v44 = vpack.c.bf16 %v644_v41, %v643_v40  ;;  %v646_v48 = vpack.c.bf16 %v640_v46, %v639_v45 }
 0x1eb   : > { %1067 = vmatmul.msk.bf16.vlgmr.msrb.gmra.mxu0 %vm535_vm1, %v645_v42  ;;  %v1130_v42 = vld [vmem:[%s1508_s6] ss:$0 sm:$0xff] }
 0x1fb   : > { %1068 = vmatmul.msk.bf16.gmra.mxu0 %vm535_vm1, %v646_v48 }
 0x20b   : > { %1069 = vmatmul.msk.bf16.gmra.mxu0 %vm535_vm1, %v647_v43 }
 0x21b   : > { %1070 = vmatmul.msk.bf16.gmra.mxu0 %vm535_vm1, %v648_v44 }
 0x268   : > { %v670_v50 = vpop.f32.mrf.mxu0 }
 0x270   : > { %v672_v51 = vpop.f32.mrf.mxu0 }
 0x271   : > { %v690_v52 = vpack.c.bf16 %v672_v51, %v670_v50 }
 0x273   : > { %1079 = vmatmul.msk.bf16.vlgmr.msrb.gmra.mxu1 %vm394_vm0, %v690_v52 }
 0x278   : > { %v675_v53 = vpop.f32.mrf.mxu0 }
 0x280   : > { %v677_v54 = vpop.f32.mrf.mxu0 }
 0x281   : > { %v691_v55 = vpack.c.bf16 %v677_v54, %v675_v53 }
 0x283   : > { %1080 = vmatmul.msk.bf16.gmra.mxu1 %vm394_vm0, %v691_v55 }
 0x288   : > { %v680_v57 = vpop.f32.mrf.mxu0 }
 0x290   : > { %v682_v58 = vpop.f32.mrf.mxu0 }
 0x291   : > { %v692_v59 = vpack.c.bf16 %v682_v58, %v680_v57 }
 0x293   : > { %1081 = vmatmul.msk.bf16.gmra.mxu1 %vm394_vm0, %v692_v59 }
 0x298   : > { %v685_v60 = vpop.f32.mrf.mxu0 }
 0x2a0   : > { %v687_v61 = vpop.f32.mrf.mxu0 }
 0x2a1   : > { %v693_v62 = vpack.c.bf16 %v687_v61, %v685_v60 }
 0x2a3   : > { %1082 = vmatmul.msk.bf16.gmra.mxu1 %vm394_vm0, %v693_v62 }
 0x2f0   : > { %v735_v0 = vpop.f32.mrf.mxu1 }
 0x2f1   : > { %v736_v2 = vadd.f32 %v1129_v1, %v735_v0 }
 0x2f3   : > { %v755_v5 = vmax.f32 %v736_v2, 0.0 }
 0x2f8   : > { %v737_v3 = vpop.f32.mrf.mxu1 }
 0x2f9   : > { %v738_v4 = vadd.f32 %v1129_v1, %v737_v3 }
 0x2fb   : > { %v756_v6 = vmax.f32 %v738_v4, 0.0 }
 0x2fd   : > { %v763_v7 = vpack.c.bf16 %v756_v6, %v755_v5 }
 0x2ff   : > { %1091 = vmatmul.msk.bf16.vlgmr.msrb.gmra.mxu2 %vm394_vm0, %v763_v7 }
 0x300   : > { %v740_v8 = vpop.f32.mrf.mxu1 }
 0x301   : > { %v741_v10 = vadd.f32 %v1129_v1, %v740_v8 }
 0x303   : > { %v757_v25 = vmax.f32 %v741_v10, 0.0 }
 0x308   : > { %v742_v14 = vpop.f32.mrf.mxu1 }
 0x309   : > { %v743_v20 = vadd.f32 %v1129_v1, %v742_v14 }
 0x30b   : > { %v758_v27 = vmax.f32 %v743_v20, 0.0 }
 0x30d   : > { %v764_v29 = vpack.c.bf16 %v758_v27, %v757_v25 }
 0x30f   : > { %1092 = vmatmul.msk.bf16.gmra.mxu2 %vm394_vm0, %v764_v29 }
 0x310   : > { %v745_v31 = vpop.f32.mrf.mxu1 }
 0x311   : > { %v746_v32 = vadd.f32 %v1129_v1, %v745_v31 }
 0x313   : > { %v759_v9 = vmax.f32 %v746_v32, 0.0 }
 0x318   : > { %v747_v23 = vpop.f32.mrf.mxu1 }
 0x319   : > { %v748_v33 = vadd.f32 %v1129_v1, %v747_v23 }
 0x31b   : > { %v760_v11 = vmax.f32 %v748_v33, 0.0 }
 0x31d   : > { %v765_v17 = vpack.c.bf16 %v760_v11, %v759_v9 }
 0x31f   : > { %1093 = vmatmul.msk.bf16.gmra.mxu2 %vm394_vm0, %v765_v17 }
 0x320   : > { %v750_v24 = vpop.f32.mrf.mxu1 }
 0x321   : > { %v751_v26 = vadd.f32 %v1129_v1, %v750_v24 }
 0x323   : > { %v761_v35 = vmax.f32 %v751_v26, 0.0 }
 0x328   : > { %v752_v28 = vpop.f32.mrf.mxu1 }
 0x329   : > { %v753_v34 = vadd.f32 %v1129_v1, %v752_v28 }
 0x32b   : > { %v762_v36 = vmax.f32 %v753_v34, 0.0 }
 0x32d   : > { %v766_v37 = vpack.c.bf16 %v762_v36, %v761_v35 }
 0x32f   : > { %1094 = vmatmul.msk.bf16.gmra.mxu2 %vm394_vm0, %v766_v37 }
 0x382   : > { %v808_v38 = vpop.f32.mrf.mxu2 }
 0x383   : > { %v809_v45 = vadd.f32 %v1130_v42, %v808_v38 }
 0x385   : > { %v1370_v47 = vadd.f32 %v809_v45, %v1257_v15 }
 0x387   : > { %v861_v60 = vmul.f32 %v1370_v47, %v1370_v47 }
 0x389   : > { %v869_v3 = vsel %vm394_vm0, %v861_v60, 0.0 }
 0x38a   : > { %v810_v39 = vpop.f32.mrf.mxu2 }
 0x38b   : > { %v811_v43 = vadd.f32 %v1130_v42, %v810_v39 }
 0x38d   : > { %v1367_v48 = vadd.f32 %v811_v43, %v1259_v16  ;;  %v836_v16 = vsel %vm394_vm0, %v1370_v47, 0.0 }
 0x38f   : > { %v837_v52 = vsel %vm394_vm0, %v1367_v48, 0.0  ;;  %v862_v58 = vmul.f32 %v1367_v48, %v1367_v48 }
 0x390   : > { %v838_v57 = vadd.f32 %v837_v52, %v836_v16 }
 0x391   : > { %v870_v1 = vsel %vm394_vm0, %v862_v58, 0.0 }
 0x392   : > { %v813_v30 = vpop.f32.mrf.mxu2  ;;  %v871_v10 = vadd.f32 %v870_v1, %v869_v3 }
 0x393   : > { %v814_v46 = vadd.f32 %v1130_v42, %v813_v30 }
 0x395   : > { %v1373_v50 = vadd.f32 %v814_v46, %v1249_v12 }
 0x397   : > { %v839_v56 = vsel %vm394_vm0, %v1373_v50, 0.0  ;;  %v863_v62 = vmul.f32 %v1373_v50, %v1373_v50 }
 0x398   : > { %v840_v61 = vadd.f32 %v839_v56, %v838_v57 }
 0x399   : > { %v872_v6 = vsel %vm394_vm0, %v863_v62, 0.0 }
 0x39a   : > { %v815_v40 = vpop.f32.mrf.mxu2  ;;  %v873_v29 = vadd.f32 %v872_v6, %v871_v10 }
 0x39b   : > { %v816_v49 = vadd.f32 %v1130_v42, %v815_v40 }
 0x39d   : > { %v1378_v53 = vadd.f32 %v816_v49, %v1251_v13 }
 0x39f   : > { %v841_v13 = vsel %vm394_vm0, %v1378_v53, 0.0 }
 0x3a0   : > { %v842_v0 = vadd.f32 %v841_v13, %v840_v61 }
 0x3a2   : > { %v818_v41 = vpop.f32.mrf.mxu2 }
 0x3a3   : > { %v819_v51 = vadd.f32 %v1130_v42, %v818_v41 }
 0x3a5   : > { %v1385_v15 = vadd.f32 %v819_v51, %v1268_v18 }
 0x3a7   : > { %v843_v63 = vsel %vm394_vm0, %v1385_v15, 0.0 }
 0x3a8   : > { %v844_v5 = vadd.f32 %v843_v63, %v842_v0 }
 0x3aa   : > { %v820_v44 = vpop.f32.mrf.mxu2 }
 0x3ab   : > { %v821_v54 = vadd.f32 %v1130_v42, %v820_v44 }
 0x3ad   : > { %v1392_v59 = vadd.f32 %v821_v54, %v1270_v19  ;;  %v864_v19 = vmul.f32 %v1378_v53, %v1378_v53 }
 0x3af   : > { %v845_v2 = vsel %vm394_vm0, %v1392_v59, 0.0  ;;  %v874_v20 = vsel %vm394_vm0, %v864_v19, 0.0  ;;  %v866_v25 = vmul.f32 %v1392_v59, %v1392_v59  ;;  %v927_v19 = vld [vmem:[%s1509_s7] sm:$0xff] }
 0x3b0   : > { %v846_v14 = vadd.f32 %v845_v2, %v844_v5  ;;  %v875_v11 = vadd.f32 %v874_v20, %v873_v29  ;;  %v945_v29 = vld [vmem:[%s1510_s8 + $0x10] sm:$0xff] }
 0x3b1   : > { %v878_v24 = vsel %vm394_vm0, %v866_v25, 0.0  ;;  %v943_v25 = vld [vmem:[%s1510_s8] sm:$0xff] }
 0x3b2   : > { %v823_v55 = vpop.f32.mrf.mxu2 }
 0x3b3   : > { %v824_v12 = vadd.f32 %v1130_v42, %v823_v55 }
 0x3b5   : > { %v1399_v18 = vadd.f32 %v824_v12, %v1277_v21  ;;  %v865_v21 = vmul.f32 %v1385_v15, %v1385_v15 }
 0x3b7   : > { %v847_v8 = vsel %vm394_vm0, %v1399_v18, 0.0  ;;  %v867_v23 = vmul.f32 %v1399_v18, %v1399_v18  ;;  %v876_v33 = vsel %vm394_vm0, %v865_v21, 0.0  ;;  %v932_v21 = vld [vmem:[%s1509_s7 + $0x28] sm:$0xff] }
 0x3b8   : > { %v848_v31 = vadd.f32 %v847_v8, %v846_v14 }
 0x3b9   : > { %v880_v26 = vsel %vm394_vm0, %v867_v23, 0.0 }
 0x3ba   : > { %v825_v4 = vpop.f32.mrf.mxu2 }
 0x3bb   : > { %v826_v7 = vadd.f32 %v1130_v42, %v825_v4 }
 0x3bd   : > { %v1418_v27 = vadd.f32 %v826_v7, %v1279_v22  ;;  %v877_v22 = vadd.f32 %v876_v33, %v875_v11  ;;  %v933_v7 = vld [vmem:[%s1509_s7 + $0x30] sm:$0xff]  ;;  %v946_v11 = vld [vmem:[%s1510_s8 + $0x18] sm:$0xff] }
 0x3bf   : > { %v849_v32 = vsel %vm394_vm0, %v1418_v27, 0.0  ;;  %v868_v17 = vmul.f32 %v1418_v27, %v1418_v27  ;;  %v879_v28 = vadd.f32 %v878_v24, %v877_v22  ;;  %v947_v22 = vld [vmem:[%s1510_s8 + $0x20] sm:$0xff] }
 0x3c0   : > { %v850_v9 = vadd.f32 %v849_v32, %v848_v31  ;;  %v934_v31 = vld [vmem:[%s1509_s7 + $0x38] sm:$0xff] }
 0x3c1   : > { %v882_v34 = vsel %vm394_vm0, %v868_v17, 0.0  ;;  %v881_v35 = vadd.f32 %v880_v26, %v879_v28  ;;  %v948_v28 = vld [vmem:[%s1510_s8 + $0x28] sm:$0xff] }
 0x3c2   : > { %851 = vadd.xlane.f32.xlu0 %v850_v9 }
 0x3c3   : > { %v883_v36 = vadd.f32 %v882_v34, %v881_v35 }
 0x3ca   : > { %884 = vadd.xlane.f32.xlu0 %v883_v36 }
 0x435   : > { %v852_v37 = vpop.xlane.xlu0 %851 }
 0x436   : > { %v853_v38 = vrot.slane %v852_v37, 4 }
 0x438   : > { %v854_v39 = vadd.f32 %v853_v38, %v852_v37  ;;  %v949_v38 = vld [vmem:[%s1510_s8 + $0x30] sm:$0xff] }
 0x43a   : > { %v855_v30 = vrot.slane %v854_v39, 2 }
 0x43c   : > { %v856_v40 = vadd.f32 %v855_v30, %v854_v39  ;;  %v950_v30 = vld [vmem:[%s1510_s8 + $0x38] sm:$0xff] }
 0x43d   : > { %v885_v41 = vpop.xlane.xlu0 %884 }
 0x43e   : > { %v886_v42 = vrot.slane %v885_v41, 4  ;;  %v857_v43 = vrot.slane %v856_v40, 1 }
 0x440   : > { %v887_v44 = vadd.f32 %v886_v42, %v885_v41  ;;  %v858_v45 = vadd.f32 %v857_v43, %v856_v40 }
 0x442   : > { %v888_v46 = vrot.slane %v887_v44, 2  ;;  %1115 = vpush %v858_v45 }
 0x444   : > { %v889_v49 = vadd.f32 %v888_v46, %v887_v44 }
 0x446   : > { %v890_v51 = vrot.slane %v889_v49, 1 }
 0x448   : > { %v891_v52 = vadd.f32 %v890_v51, %v889_v49 }
 0x44a   : > { %1117 = vpush %v891_v52 }
 0x473   : > { %s1116_s16 = spop %1115 }
 0x474   : > { %s860_s17 = smul.f32 0.00048828125, %s1116_s16 }
 0x476   : > { %s894_s18 = smul.f32 %s860_s17, %s860_s17  ;;  %v909_v60 = vstv %s860_s17 }
 0x477   : > { %v910_v61 = vsub.f32 %v1370_v47, %v909_v60  ;;  %v911_v62 = vsub.f32 %v1367_v48, %v909_v60  ;;  %v912_v63 = vsub.f32 %v1373_v50, %v909_v60  ;;  %v913_v0 = vsub.f32 %v1378_v53, %v909_v60  ;;  %v928_v48 = vld [vmem:[%s1509_s7 + $0x8] sm:$0xff]  ;;  %v929_v50 = vld [vmem:[%s1509_s7 + $0x10] sm:$0xff]  ;;  %v930_v53 = vld [vmem:[%s1509_s7 + $0x18] sm:$0xff] }
 0x478   : > { %v914_v1 = vsub.f32 %v1385_v15, %v909_v60  ;;  %v915_v2 = vsub.f32 %v1392_v59, %v909_v60  ;;  %v916_v3 = vsub.f32 %v1399_v18, %v909_v60  ;;  %v917_v4 = vsub.f32 %v1418_v27, %v909_v60  ;;  %v931_v18 = vld [vmem:[%s1509_s7 + $0x20] sm:$0xff]  ;;  %v944_v27 = vld [vmem:[%s1510_s8 + $0x8] sm:$0xff] }
 0x47b   : > { %s1118_s19 = spop %1117 }
 0x47c   : > { %s893_s20 = smul.f32 0.00048828125, %s1118_s19 }
 0x47e   : > { %s895_s21 = ssub.f32 %s893_s20, %s894_s18 }
 0x480   : > { %s896_s22 = sadd.f32 1e-05, %s895_s21 }
 0x482   : > { %v897_v54 = vstv %s896_s22 }
 0x483   : > { %1149 = vrsqrt.f32 %v897_v54  ;;  %vm904_vm3 = vweird.f32 %v897_v54 }
 0x489   : > { %v1150_v55 = vpop.eup %1149 }
 0x48a   : > { %v899_v16 = vmul.f32 %v1150_v55, %v897_v54  ;;  %vm905_vm2 = vweird.f32 %v1150_v55 }
 0x48b   : > { %vm906_vm4 = vmor %vm904_vm3, %vm905_vm2 }
 0x48c   : > { %v900_v56 = vmul.f32 %v1150_v55, %v899_v16 }
 0x48e   : > { %v901_v12 = vmul.f32 0.5, %v900_v56 }
 0x490   : > { %v902_v57 = vsub.f32 1.5, %v901_v12 }
 0x492   : > { %v903_v58 = vmul.f32 %v1150_v55, %v902_v57 }
 0x494   : > { %v907_v13 = vsel %vm906_vm4, %v1150_v55, %v903_v58 }
 0x495   : > { %1119 = vpush %v907_v13 }
 0x4c6   : > { %s1120_s23 = spop %1119 }
 0x4c7   : > { %v918_v47 = vstv %s1120_s23 }
 0x4c8   : > { %v919_v15 = vmul.f32 %v918_v47, %v910_v61  ;;  %v920_v5 = vmul.f32 %v918_v47, %v911_v62  ;;  %v921_v59 = vmul.f32 %v918_v47, %v912_v63  ;;  %v922_v6 = vmul.f32 %v918_v47, %v913_v0 }
 0x4c9   : > { %v923_v8 = vmul.f32 %v918_v47, %v914_v1  ;;  %v924_v10 = vmul.f32 %v918_v47, %v915_v2  ;;  %v925_v14 = vmul.f32 %v918_v47, %v916_v3  ;;  %v926_v20 = vmul.f32 %v918_v47, %v917_v4 }
 0x4ca   : > { %v935_v32 = vmul.f32 %v927_v19, %v919_v15  ;;  %v936_v23 = vmul.f32 %v928_v48, %v920_v5  ;;  %v937_v33 = vmul.f32 %v929_v50, %v921_v59  ;;  %v938_v9 = vmul.f32 %v930_v53, %v922_v6 }
 0x4cb   : > { %v939_v17 = vmul.f32 %v931_v18, %v923_v8  ;;  %v940_v24 = vmul.f32 %v932_v21, %v924_v10  ;;  %v941_v26 = vmul.f32 %v933_v7, %v925_v14  ;;  %v942_v37 = vmul.f32 %v934_v31, %v926_v20 }
 0x4cc   : > { %v951_v34 = vadd.f32 %v943_v25, %v935_v32  ;;  %v952_v35 = vadd.f32 %v944_v27, %v936_v23  ;;  %v953_v36 = vadd.f32 %v945_v29, %v937_v33  ;;  %v954_v39 = vadd.f32 %v946_v11, %v938_v9 }
 0x4cd   : > { %v955_v40 = vadd.f32 %v947_v22, %v939_v17  ;;  %v956_v41 = vadd.f32 %v948_v28, %v940_v24  ;;  %v957_v42 = vadd.f32 %v949_v38, %v941_v26  ;;  %v958_v43 = vadd.f32 %v950_v30, %v942_v37 }
 0x4ce   : > { %959 = vst.msk [vmem:[%s332_s14] sm:$0xff] %vm394_vm0, %v951_v34 }
 0x4cf   : > { %960 = vst.msk [vmem:[%s332_s14 + $0x8] sm:$0xff] %vm394_vm0, %v952_v35 }
 0x4d0   : > { %961 = vst.msk [vmem:[%s332_s14 + $0x10] sm:$0xff] %vm394_vm0, %v953_v36 }
 0x4d1   : > { %962 = vst.msk [vmem:[%s332_s14 + $0x18] sm:$0xff] %vm394_vm0, %v954_v39 }
 0x4d2   : > { %963 = vst.msk [vmem:[%s332_s14 + $0x20] sm:$0xff] %vm394_vm0, %v955_v40 }
 0x4d3   : > { %964 = vst.msk [vmem:[%s332_s14 + $0x28] sm:$0xff] %vm394_vm0, %v956_v41 }
 0x4d4   : > { %965 = vst.msk [vmem:[%s332_s14 + $0x30] sm:$0xff] %vm394_vm0, %v957_v42 }
 0x4d5   : > { %966 = vst.msk [vmem:[%s332_s14 + $0x38] sm:$0xff] %vm394_vm0, %v958_v43 }
 0x4d6 PF: > { %s19_s30 = sadd.s32 1, %s1157_s30  }
 0x4d7   : > { %p16_p4 = scmp.ge.s32.totalorder %s19_s30, 4  }
 0x4d9   :  { %18 = sbr.rel (!%p16_p4) target bundleno = 1 (0x1), region = 86 }

</bundles_post_ra>
